<compile_context>
chip_gen: v7x
topology: tpu7x:2x2x1
jax: 0.10.0
libtpu: 0.0.40
codegen_flags: <defaults>
</compile_context>

<pallas_src>
import functools

import jax
import jax.numpy as jnp
from jax import lax
from jax.experimental import pallas as pl
from jax.experimental.pallas import tpu as pltpu


# ----------------------------------------------------------------------------
# Fused Pallas kernel
# ----------------------------------------------------------------------------
def _fused_fra_kernel(v_ref, wvh_ref, bvh_ref, ra_ref, wr_ref, woh_ref,
                      bo_ref, o_ref, *, mxu_dtype):
    # v_ref  : (S, B, d_v)        raw values
    # wvh_ref: (H, d_v, hd)       linear_v weight, per-head, pre-transposed
    # bvh_ref: (H, 1, hd)         linear_v bias, per head
    # ra_ref : (1, H, tT, kf)     randatt1 rows for this T-tile
    # wr_ref : (S, kf)            randatt2.weight rows [:S]
    # woh_ref: (H, hd, out)       linear_o weight, per-head row block, pre-T
    # bo_ref : (1, out)           linear_o bias
    # o_ref  : (tT, B, out)
    S, B, _ = v_ref.shape
    H = wvh_ref.shape[0]
    tT = ra_ref.shape[2]
    kf = ra_ref.shape[3]
    out_sz = o_ref.shape[-1]
    f32 = jnp.float32
    cdt = mxu_dtype

    # --- scores for ALL heads in one MXU call (independent of batch) --------
    # (H*tT, kf) @ (kf, S)  via dot_general contracting dims ((1,), (1,)):
    # no explicit transpose of randatt2.weight is materialized.
    ra = ra_ref[0].reshape(H * tT, kf)
    wr = wr_ref[...]
    s = lax.dot_general(ra.astype(cdt), wr.astype(cdt),
                        (((1,), (1,)), ((), ())),
                        preferred_element_type=f32)            # (H*tT, S)
    s = s - jnp.max(s, axis=-1, keepdims=True)
    p = jnp.exp(s)                                              # f32 (EUP)
    p = p * pl.reciprocal(jnp.sum(p, axis=-1, keepdims=True), approx=True)

    bo = bo_ref[...].astype(f32)                                # (1, out)

    # --- per-(batch, head) value path; everything stays resident in VMEM ----
    # B and H are tiny / static here, so the loops are fully unrolled at trace
    # time; the softmaxed probs p are reused across the batch (no recompute).
    for b in range(B):
        v_b = v_ref[:, b, :]                                    # (S, d_v)
        acc = jnp.zeros((tT, out_sz), f32)
        for h in range(H):
            # linear_v, head-h output columns only: (S, d_v) @ (d_v, hd)
            vp = jnp.dot(v_b.astype(cdt), wvh_ref[h].astype(cdt),
                         preferred_element_type=f32)
            vp = vp + bvh_ref[h].astype(f32)                    # (S, hd) f32
            # P @ V : (tT, S) @ (S, hd)
            p_h = p[h * tT:(h + 1) * tT, :]
            o_h = jnp.dot(p_h.astype(cdt), vp.astype(cdt),
                          preferred_element_type=f32)           # (tT, hd)
            # linear_o, head-h rows of W_o, accumulated in f32
            acc = acc + jnp.dot(o_h.astype(cdt), woh_ref[h].astype(cdt),
                                preferred_element_type=f32)     # (tT, out)
        o_ref[:, b, :] = (acc + bo).astype(o_ref.dtype)


# ----------------------------------------------------------------------------
# Module wrapper
# ----------------------------------------------------------------------------
def factorized_random_attention(q, k, v, params, num_heads, *,
                                mxu_dtype=jnp.float32, t_tile=None):
    del k  # never used by this module's forward pass
    T, B, _ = q.shape
    S, _, d_v = v.shape
    hidden = params["Wv"].shape[0]
    out_size = params["Wo"].shape[0]
    H = num_heads
    assert hidden % H == 0
    hd = hidden // H
    maxlen, kf = params["Wr"].shape
    assert T <= maxlen and S <= maxlen

    if t_tile is None:
        t_tile = T            # whole problem fits comfortably in VMEM
    assert T % t_tile == 0
    n_t = T // t_tile

    # Per-head weight stacks, pre-transposed to (in, out).  These are tiny,
    # jit-constant weight reshapes done once outside the kernel so the kernel
    # never transposes and only indexes the leading (head) dim.
    wv_h = jnp.transpose(params["Wv"].reshape(H, hd, d_v), (0, 2, 1))   # (H, d_v, hd)
    bv_h = params["bv"].reshape(H, 1, hd)                               # (H, 1, hd)
    wo_h = jnp.transpose(params["Wo"], (1, 0)).reshape(H, hd, out_size) # (H, hd, out)
    bo = params["bo"].reshape(1, out_size)

    kernel = functools.partial(_fused_fra_kernel, mxu_dtype=mxu_dtype)

    out = pl.pallas_call(
        kernel,
        out_shape=jax.ShapeDtypeStruct((T, B, out_size), q.dtype),
        grid_spec=pl.GridSpec(
            grid=(n_t,),
            in_specs=[
                pl.BlockSpec((S, B, d_v), lambda t: (0, 0, 0)),            # v
                pl.BlockSpec((H, d_v, hd), lambda t: (0, 0, 0)),           # Wv (per head)
                pl.BlockSpec((H, 1, hd), lambda t: (0, 0, 0)),             # bv (per head)
                pl.BlockSpec((1, H, t_tile, kf), lambda t: (0, 0, t, 0)),  # randatt1[:, :, tT window, :]
                pl.BlockSpec((S, kf), lambda t: (0, 0)),                   # randatt2.weight[:S]
                pl.BlockSpec((H, hd, out_size), lambda t: (0, 0, 0)),      # Wo (per head)
                pl.BlockSpec((1, out_size), lambda t: (0, 0)),             # bo
            ],
            out_specs=pl.BlockSpec((t_tile, B, out_size), lambda t: (t, 0, 0)),
        ),
        compiler_params=pltpu.CompilerParams(
            dimension_semantics=("parallel",),       # T-tiles are independent
            vmem_limit_bytes=32 * 1024 * 1024,       # tiny working set; v7x-safe
        ),
    )(v, wv_h, bv_h, params["randatt1"], params["Wr"], wo_h, bo)
    return out


# ----------------------------------------------------------------------------
# Deterministic parameter init (mirrors the shapes in __init__)
# ----------------------------------------------------------------------------
def _xavier_uniform(key, shape, fan_in, fan_out, gain=1.0):
    bound = gain * (6.0 / (fan_in + fan_out)) ** 0.5
    return jax.random.uniform(key, shape, jnp.float32, -bound, bound)


def init_params(key, hidden_size, num_heads, v_size, output_size,
                maxlen=256, kf=8):
    keys = jax.random.split(key, 5)
    gain_v = 1.0 / 2 ** 0.5  # q_size == v_size path in reset_parameters
    randatt1 = _xavier_uniform(keys[0], (1, num_heads, maxlen, kf),
                               fan_in=num_heads * maxlen * kf,
                               fan_out=1 * maxlen * kf)
    Wr = _xavier_uniform(keys[1], (maxlen, kf), fan_in=kf, fan_out=maxlen)
    Wv = _xavier_uniform(keys[2], (hidden_size, v_size),
                         fan_in=v_size, fan_out=hidden_size, gain=gain_v)
    bv_bound = 1.0 / (v_size ** 0.5)  # torch.nn.Linear default bias init
    bv = jax.random.uniform(keys[3], (hidden_size,), jnp.float32,
                            -bv_bound, bv_bound)
    Wo = _xavier_uniform(keys[4], (output_size, hidden_size),
                         fan_in=hidden_size, fan_out=output_size)
    bo = jnp.zeros((output_size,), jnp.float32)
    return dict(randatt1=randatt1, Wr=Wr, Wv=Wv, bv=bv, Wo=Wo, bo=bo)


# ----------------------------------------------------------------------------
# Pure-JAX reference (mirrors the PyTorch forward)
# ----------------------------------------------------------------------------
def reference(q, k, v, params, num_heads):
    del k
    T, B, _ = q.shape
    S = v.shape[0]
    hidden = params["Wv"].shape[0]
    H, hd = num_heads, hidden // num_heads
    vp = v @ params["Wv"].T + params["bv"]                       # (S, B, hidden)
    vh = jnp.transpose(vp.reshape(S, B * H, hd), (1, 0, 2))      # (B*H, S, hd)
    randatt = jnp.einsum("ohmk,nk->ohmn", params["randatt1"], params["Wr"])
    score = randatt[0, :, :T, :S]                                # (H, T, S)
    score = jnp.broadcast_to(score[None], (B, H, T, S)).reshape(B * H, T, S)
    score = jax.nn.softmax(score, axis=-1)
    o = jnp.einsum("bts,bsd->btd", score, vh)                    # (B*H, T, hd)
    o = jnp.transpose(o, (1, 0, 2)).reshape(T, B, hidden)
    return o @ params["Wo"].T + params["bo"]


# ----------------------------------------------------------------------------
if __name__ == "__main__":
    hidden_size = 32
    num_heads = 4
    T, S, B = 8, 8, 2
    d_q = d_k = d_v = hidden_size
    output_size = hidden_size

    root = jax.random.PRNGKey(0)
    kp, kq, kk, kv = jax.random.split(root, 4)

    params = init_params(kp, hidden_size, num_heads, d_v, output_size)
    q = jax.random.normal(kq, (T, B, d_q), jnp.float32)
    k = jax.random.normal(kk, (S, B, d_k), jnp.float32)
    v = jax.random.normal(kv, (S, B, d_v), jnp.float32)

    fwd = jax.jit(lambda q, k, v: factorized_random_attention(
        q, k, v, params, num_heads))
    out = fwd(q, k, v)
    jax.block_until_ready(out)

    ref = reference(q, k, v, params, num_heads)
    assert out.shape == (T, B, output_size), out.shape
    # Tolerance sized for the EUP approx-reciprocal used in the softmax
    # normalization (everything else accumulates in f32; with approx=False the
    # kernel matches the reference to ~1e-6).
    assert jnp.allclose(out, ref, atol=2e-3, rtol=2e-3), (
        float(jnp.max(jnp.abs(out - ref))))
    print("KERNEL_OK")
</pallas_src>

<mosaic_0001>
module attributes {stable_mosaic.version = 11 : i64} {
  func.func @_fused_fra_kernel(%arg0: i32, %arg1: memref<8x2x32xf32, #tpu.memory_space<vmem>>, %arg2: memref<4x32x8xf32, #tpu.memory_space<vmem>>, %arg3: memref<4x1x8xf32, #tpu.memory_space<vmem>>, %arg4: memref<1x4x8x8xf32, #tpu.memory_space<vmem>>, %arg5: memref<8x8xf32, #tpu.memory_space<vmem>>, %arg6: memref<4x8x32xf32, #tpu.memory_space<vmem>>, %arg7: memref<1x32xf32, #tpu.memory_space<vmem>>, %arg8: memref<8x2x32xf32, #tpu.memory_space<vmem>>) attributes {dimension_semantics = [#tpu.dimension_semantics<parallel>], iteration_bounds = array<i64: 1>, scalar_prefetch = 0 : i64, scratch_operands = 0 : i64, tpu.core_type = #tpu.core_type<tc>, window_params = [{pipeline_mode = #tpu.pipeline_mode<synchronous>, transform_indices = @transform_0, window_bounds = array<i64: 8, 2, 32>}, {pipeline_mode = #tpu.pipeline_mode<synchronous>, transform_indices = @transform_1, window_bounds = array<i64: 4, 32, 8>}, {pipeline_mode = #tpu.pipeline_mode<synchronous>, transform_indices = @transform_2, window_bounds = array<i64: 4, 1, 8>}, {transform_indices = @transform_3, window_bounds = array<i64: 1, 4, 8, 8>}, {transform_indices = @transform_4, window_bounds = array<i64: 8, 8>}, {pipeline_mode = #tpu.pipeline_mode<synchronous>, transform_indices = @transform_5, window_bounds = array<i64: 4, 8, 32>}, {pipeline_mode = #tpu.pipeline_mode<synchronous>, transform_indices = @transform_6, window_bounds = array<i64: 1, 32>}, {transform_indices = @transform_7, window_bounds = array<i64: 8, 2, 32>}]} {
    %c0 = arith.constant 0 : index
    %c0_0 = arith.constant 0 : index
    %c0_1 = arith.constant 0 : index
    %c0_2 = arith.constant 0 : index
    %0 = vector.load %arg4[%c0, %c0_0, %c0_1, %c0_2] : memref<1x4x8x8xf32, #tpu.memory_space<vmem>>, vector<1x4x8x8xf32>
    %1 = vector.shape_cast %0 : vector<1x4x8x8xf32> to vector<4x8x8xf32>
    %2 = vector.shape_cast %1 : vector<4x8x8xf32> to vector<32x8xf32>
    %c0_3 = arith.constant 0 : index
    %c0_4 = arith.constant 0 : index
    %3 = vector.load %arg5[%c0_3, %c0_4] : memref<8x8xf32, #tpu.memory_space<vmem>>, vector<8x8xf32>
    %cst = arith.constant dense<0.000000e+00> : vector<32x8xf32>
    %4 = tpu.matmul %2, %3, %cst {dimension_numbers = #tpu.dot_dimension_numbers<[1], [1], [0], [0], [0, 0, 1, 0], [], []>} : vector<32x8xf32>, vector<8x8xf32>, vector<32x8xf32> -> vector<32x8xf32>
    %cst_5 = arith.constant dense<0xFF800000> : vector<32xf32>
    %5 = vector.multi_reduction <maximumf>, %4, %cst_5 [1] : vector<32x8xf32> to vector<32xf32>
    %6 = vector.shape_cast %5 : vector<32xf32> to vector<32x1xf32>
    %7 = vector.broadcast %6 : vector<32x1xf32> to vector<32x8xf32>
    %8 = arith.subf %4, %7 : vector<32x8xf32>
    %9 = math.exp %8 : vector<32x8xf32>
    %cst_6 = arith.constant dense<0.000000e+00> : vector<32xf32>
    %10 = vector.multi_reduction <add>, %9, %cst_6 [1] : vector<32x8xf32> to vector<32xf32>
    %11 = vector.shape_cast %10 : vector<32xf32> to vector<32x1xf32>
    %12 = tpu.reciprocal %11 {approx = true} : vector<32x1xf32> -> vector<32x1xf32>
    %13 = vector.broadcast %12 : vector<32x1xf32> to vector<32x8xf32>
    %14 = arith.mulf %9, %13 : vector<32x8xf32>
    %c0_7 = arith.constant 0 : index
    %c0_8 = arith.constant 0 : index
    %15 = vector.load %arg7[%c0_7, %c0_8] : memref<1x32xf32, #tpu.memory_space<vmem>>, vector<1x32xf32>
    %c0_9 = arith.constant 0 : index
    %c0_10 = arith.constant 0 : index
    %c0_11 = arith.constant 0 : index
    %16 = vector.load %arg1[%c0_9, %c0_10, %c0_11] : memref<8x2x32xf32, #tpu.memory_space<vmem>>, vector<8x1x32xf32>
    %17 = vector.shape_cast %16 : vector<8x1x32xf32> to vector<8x32xf32>
    %cst_12 = arith.constant 0.000000e+00 : f32
    %18 = vector.broadcast %cst_12 : f32 to vector<8x32xf32>
    %c0_13 = arith.constant 0 : index
    %c0_14 = arith.constant 0 : index
    %c0_15 = arith.constant 0 : index
    %19 = vector.load %arg2[%c0_13, %c0_14, %c0_15] : memref<4x32x8xf32, #tpu.memory_space<vmem>>, vector<1x32x8xf32>
    %20 = vector.shape_cast %19 : vector<1x32x8xf32> to vector<32x8xf32>
    %cst_16 = arith.constant dense<0.000000e+00> : vector<8x8xf32>
    %21 = tpu.matmul %17, %20, %cst_16 {dimension_numbers = #tpu.dot_dimension_numbers<[1], [0], [0], [1], [0, 0, 1, 1], [], []>} : vector<8x32xf32>, vector<32x8xf32>, vector<8x8xf32> -> vector<8x8xf32>
    %c0_17 = arith.constant 0 : index
    %c0_18 = arith.constant 0 : index
    %c0_19 = arith.constant 0 : index
    %22 = vector.load %arg3[%c0_17, %c0_18, %c0_19] : memref<4x1x8xf32, #tpu.memory_space<vmem>>, vector<1x1x8xf32>
    %23 = vector.shape_cast %22 : vector<1x1x8xf32> to vector<1x8xf32>
    %24 = vector.broadcast %23 : vector<1x8xf32> to vector<8x8xf32>
    %25 = arith.addf %21, %24 : vector<8x8xf32>
    %26 = vector.extract_strided_slice %14 {offsets = [0, 0], sizes = [8, 8], strides = [1, 1]} : vector<32x8xf32> to vector<8x8xf32>
    %cst_20 = arith.constant dense<0.000000e+00> : vector<8x8xf32>
    %27 = tpu.matmul %26, %25, %cst_20 {dimension_numbers = #tpu.dot_dimension_numbers<[1], [0], [0], [1], [0, 0, 1, 1], [], []>} : vector<8x8xf32>, vector<8x8xf32>, vector<8x8xf32> -> vector<8x8xf32>
    %c0_21 = arith.constant 0 : index
    %c0_22 = arith.constant 0 : index
    %c0_23 = arith.constant 0 : index
    %28 = vector.load %arg6[%c0_21, %c0_22, %c0_23] : memref<4x8x32xf32, #tpu.memory_space<vmem>>, vector<1x8x32xf32>
    %29 = vector.shape_cast %28 : vector<1x8x32xf32> to vector<8x32xf32>
    %cst_24 = arith.constant dense<0.000000e+00> : vector<8x32xf32>
    %30 = tpu.matmul %27, %29, %cst_24 {dimension_numbers = #tpu.dot_dimension_numbers<[1], [0], [0], [1], [0, 0, 1, 1], [], []>} : vector<8x8xf32>, vector<8x32xf32>, vector<8x32xf32> -> vector<8x32xf32>
    %31 = arith.addf %18, %30 : vector<8x32xf32>
    %c1 = arith.constant 1 : index
    %c0_25 = arith.constant 0 : index
    %c0_26 = arith.constant 0 : index
    %32 = vector.load %arg2[%c1, %c0_25, %c0_26] : memref<4x32x8xf32, #tpu.memory_space<vmem>>, vector<1x32x8xf32>
    %33 = vector.shape_cast %32 : vector<1x32x8xf32> to vector<32x8xf32>
    %cst_27 = arith.constant dense<0.000000e+00> : vector<8x8xf32>
    %34 = tpu.matmul %17, %33, %cst_27 {dimension_numbers = #tpu.dot_dimension_numbers<[1], [0], [0], [1], [0, 0, 1, 1], [], []>} : vector<8x32xf32>, vector<32x8xf32>, vector<8x8xf32> -> vector<8x8xf32>
    %c1_28 = arith.constant 1 : index
    %c0_29 = arith.constant 0 : index
    %c0_30 = arith.constant 0 : index
    %35 = vector.load %arg3[%c1_28, %c0_29, %c0_30] : memref<4x1x8xf32, #tpu.memory_space<vmem>>, vector<1x1x8xf32>
    %36 = vector.shape_cast %35 : vector<1x1x8xf32> to vector<1x8xf32>
    %37 = vector.broadcast %36 : vector<1x8xf32> to vector<8x8xf32>
    %38 = arith.addf %34, %37 : vector<8x8xf32>
    %39 = vector.extract_strided_slice %14 {offsets = [8, 0], sizes = [8, 8], strides = [1, 1]} : vector<32x8xf32> to vector<8x8xf32>
    %cst_31 = arith.constant dense<0.000000e+00> : vector<8x8xf32>
    %40 = tpu.matmul %39, %38, %cst_31 {dimension_numbers = #tpu.dot_dimension_numbers<[1], [0], [0], [1], [0, 0, 1, 1], [], []>} : vector<8x8xf32>, vector<8x8xf32>, vector<8x8xf32> -> vector<8x8xf32>
    %c1_32 = arith.constant 1 : index
    %c0_33 = arith.constant 0 : index
    %c0_34 = arith.constant 0 : index
    %41 = vector.load %arg6[%c1_32, %c0_33, %c0_34] : memref<4x8x32xf32, #tpu.memory_space<vmem>>, vector<1x8x32xf32>
    %42 = vector.shape_cast %41 : vector<1x8x32xf32> to vector<8x32xf32>
    %cst_35 = arith.constant dense<0.000000e+00> : vector<8x32xf32>
    %43 = tpu.matmul %40, %42, %cst_35 {dimension_numbers = #tpu.dot_dimension_numbers<[1], [0], [0], [1], [0, 0, 1, 1], [], []>} : vector<8x8xf32>, vector<8x32xf32>, vector<8x32xf32> -> vector<8x32xf32>
    %44 = arith.addf %31, %43 : vector<8x32xf32>
    %c2 = arith.constant 2 : index
    %c0_36 = arith.constant 0 : index
    %c0_37 = arith.constant 0 : index
    %45 = vector.load %arg2[%c2, %c0_36, %c0_37] : memref<4x32x8xf32, #tpu.memory_space<vmem>>, vector<1x32x8xf32>
    %46 = vector.shape_cast %45 : vector<1x32x8xf32> to vector<32x8xf32>
    %cst_38 = arith.constant dense<0.000000e+00> : vector<8x8xf32>
    %47 = tpu.matmul %17, %46, %cst_38 {dimension_numbers = #tpu.dot_dimension_numbers<[1], [0], [0], [1], [0, 0, 1, 1], [], []>} : vector<8x32xf32>, vector<32x8xf32>, vector<8x8xf32> -> vector<8x8xf32>
    %c2_39 = arith.constant 2 : index
    %c0_40 = arith.constant 0 : index
    %c0_41 = arith.constant 0 : index
    %48 = vector.load %arg3[%c2_39, %c0_40, %c0_41] : memref<4x1x8xf32, #tpu.memory_space<vmem>>, vector<1x1x8xf32>
    %49 = vector.shape_cast %48 : vector<1x1x8xf32> to vector<1x8xf32>
    %50 = vector.broadcast %49 : vector<1x8xf32> to vector<8x8xf32>
    %51 = arith.addf %47, %50 : vector<8x8xf32>
    %52 = vector.extract_strided_slice %14 {offsets = [16, 0], sizes = [8, 8], strides = [1, 1]} : vector<32x8xf32> to vector<8x8xf32>
    %cst_42 = arith.constant dense<0.000000e+00> : vector<8x8xf32>
    %53 = tpu.matmul %52, %51, %cst_42 {dimension_numbers = #tpu.dot_dimension_numbers<[1], [0], [0], [1], [0, 0, 1, 1], [], []>} : vector<8x8xf32>, vector<8x8xf32>, vector<8x8xf32> -> vector<8x8xf32>
    %c2_43 = arith.constant 2 : index
    %c0_44 = arith.constant 0 : index
    %c0_45 = arith.constant 0 : index
    %54 = vector.load %arg6[%c2_43, %c0_44, %c0_45] : memref<4x8x32xf32, #tpu.memory_space<vmem>>, vector<1x8x32xf32>
    %55 = vector.shape_cast %54 : vector<1x8x32xf32> to vector<8x32xf32>
    %cst_46 = arith.constant dense<0.000000e+00> : vector<8x32xf32>
    %56 = tpu.matmul %53, %55, %cst_46 {dimension_numbers = #tpu.dot_dimension_numbers<[1], [0], [0], [1], [0, 0, 1, 1], [], []>} : vector<8x8xf32>, vector<8x32xf32>, vector<8x32xf32> -> vector<8x32xf32>
    %57 = arith.addf %44, %56 : vector<8x32xf32>
    %c3 = arith.constant 3 : index
    %c0_47 = arith.constant 0 : index
    %c0_48 = arith.constant 0 : index
    %58 = vector.load %arg2[%c3, %c0_47, %c0_48] : memref<4x32x8xf32, #tpu.memory_space<vmem>>, vector<1x32x8xf32>
    %59 = vector.shape_cast %58 : vector<1x32x8xf32> to vector<32x8xf32>
    %cst_49 = arith.constant dense<0.000000e+00> : vector<8x8xf32>
    %60 = tpu.matmul %17, %59, %cst_49 {dimension_numbers = #tpu.dot_dimension_numbers<[1], [0], [0], [1], [0, 0, 1, 1], [], []>} : vector<8x32xf32>, vector<32x8xf32>, vector<8x8xf32> -> vector<8x8xf32>
    %c3_50 = arith.constant 3 : index
    %c0_51 = arith.constant 0 : index
    %c0_52 = arith.constant 0 : index
    %61 = vector.load %arg3[%c3_50, %c0_51, %c0_52] : memref<4x1x8xf32, #tpu.memory_space<vmem>>, vector<1x1x8xf32>
    %62 = vector.shape_cast %61 : vector<1x1x8xf32> to vector<1x8xf32>
    %63 = vector.broadcast %62 : vector<1x8xf32> to vector<8x8xf32>
    %64 = arith.addf %60, %63 : vector<8x8xf32>
    %65 = vector.extract_strided_slice %14 {offsets = [24, 0], sizes = [8, 8], strides = [1, 1]} : vector<32x8xf32> to vector<8x8xf32>
    %cst_53 = arith.constant dense<0.000000e+00> : vector<8x8xf32>
    %66 = tpu.matmul %65, %64, %cst_53 {dimension_numbers = #tpu.dot_dimension_numbers<[1], [0], [0], [1], [0, 0, 1, 1], [], []>} : vector<8x8xf32>, vector<8x8xf32>, vector<8x8xf32> -> vector<8x8xf32>
    %c3_54 = arith.constant 3 : index
    %c0_55 = arith.constant 0 : index
    %c0_56 = arith.constant 0 : index
    %67 = vector.load %arg6[%c3_54, %c0_55, %c0_56] : memref<4x8x32xf32, #tpu.memory_space<vmem>>, vector<1x8x32xf32>
    %68 = vector.shape_cast %67 : vector<1x8x32xf32> to vector<8x32xf32>
    %cst_57 = arith.constant dense<0.000000e+00> : vector<8x32xf32>
    %69 = tpu.matmul %66, %68, %cst_57 {dimension_numbers = #tpu.dot_dimension_numbers<[1], [0], [0], [1], [0, 0, 1, 1], [], []>} : vector<8x8xf32>, vector<8x32xf32>, vector<8x32xf32> -> vector<8x32xf32>
    %70 = arith.addf %57, %69 : vector<8x32xf32>
    %71 = vector.broadcast %15 : vector<1x32xf32> to vector<8x32xf32>
    %72 = arith.addf %70, %71 : vector<8x32xf32>
    %c0_58 = arith.constant 0 : index
    %c0_59 = arith.constant 0 : index
    %c0_60 = arith.constant 0 : index
    %73 = vector.load %arg8[%c0_58, %c0_59, %c0_60] : memref<8x2x32xf32, #tpu.memory_space<vmem>>, vector<8x1x32xf32>
    %74 = vector.shape_cast %73 : vector<8x1x32xf32> to vector<8x32xf32>
    %75 = vector.shape_cast %72 : vector<8x32xf32> to vector<8x1x32xf32>
    tpu.vector_store %arg8[%c0_58, %c0_59, %c0_60], %75 {strides = array<i32>} : memref<8x2x32xf32, #tpu.memory_space<vmem>>, vector<8x1x32xf32>,
    %c0_61 = arith.constant 0 : index
    %c1_62 = arith.constant 1 : index
    %c0_63 = arith.constant 0 : index
    %76 = vector.load %arg1[%c0_61, %c1_62, %c0_63] : memref<8x2x32xf32, #tpu.memory_space<vmem>>, vector<8x1x32xf32>
    %77 = vector.shape_cast %76 : vector<8x1x32xf32> to vector<8x32xf32>
    %cst_64 = arith.constant 0.000000e+00 : f32
    %78 = vector.broadcast %cst_64 : f32 to vector<8x32xf32>
    %c0_65 = arith.constant 0 : index
    %c0_66 = arith.constant 0 : index
    %c0_67 = arith.constant 0 : index
    %79 = vector.load %arg2[%c0_65, %c0_66, %c0_67] : memref<4x32x8xf32, #tpu.memory_space<vmem>>, vector<1x32x8xf32>
    %80 = vector.shape_cast %79 : vector<1x32x8xf32> to vector<32x8xf32>
    %cst_68 = arith.constant dense<0.000000e+00> : vector<8x8xf32>
    %81 = tpu.matmul %77, %80, %cst_68 {dimension_numbers = #tpu.dot_dimension_numbers<[1], [0], [0], [1], [0, 0, 1, 1], [], []>} : vector<8x32xf32>, vector<32x8xf32>, vector<8x8xf32> -> vector<8x8xf32>
    %c0_69 = arith.constant 0 : index
    %c0_70 = arith.constant 0 : index
    %c0_71 = arith.constant 0 : index
    %82 = vector.load %arg3[%c0_69, %c0_70, %c0_71] : memref<4x1x8xf32, #tpu.memory_space<vmem>>, vector<1x1x8xf32>
    %83 = vector.shape_cast %82 : vector<1x1x8xf32> to vector<1x8xf32>
    %84 = vector.broadcast %83 : vector<1x8xf32> to vector<8x8xf32>
    %85 = arith.addf %81, %84 : vector<8x8xf32>
    %86 = vector.extract_strided_slice %14 {offsets = [0, 0], sizes = [8, 8], strides = [1, 1]} : vector<32x8xf32> to vector<8x8xf32>
    %cst_72 = arith.constant dense<0.000000e+00> : vector<8x8xf32>
    %87 = tpu.matmul %86, %85, %cst_72 {dimension_numbers = #tpu.dot_dimension_numbers<[1], [0], [0], [1], [0, 0, 1, 1], [], []>} : vector<8x8xf32>, vector<8x8xf32>, vector<8x8xf32> -> vector<8x8xf32>
    %c0_73 = arith.constant 0 : index
    %c0_74 = arith.constant 0 : index
    %c0_75 = arith.constant 0 : index
    %88 = vector.load %arg6[%c0_73, %c0_74, %c0_75] : memref<4x8x32xf32, #tpu.memory_space<vmem>>, vector<1x8x32xf32>
    %89 = vector.shape_cast %88 : vector<1x8x32xf32> to vector<8x32xf32>
    %cst_76 = arith.constant dense<0.000000e+00> : vector<8x32xf32>
    %90 = tpu.matmul %87, %89, %cst_76 {dimension_numbers = #tpu.dot_dimension_numbers<[1], [0], [0], [1], [0, 0, 1, 1], [], []>} : vector<8x8xf32>, vector<8x32xf32>, vector<8x32xf32> -> vector<8x32xf32>
    %91 = arith.addf %78, %90 : vector<8x32xf32>
    %c1_77 = arith.constant 1 : index
    %c0_78 = arith.constant 0 : index
    %c0_79 = arith.constant 0 : index
    %92 = vector.load %arg2[%c1_77, %c0_78, %c0_79] : memref<4x32x8xf32, #tpu.memory_space<vmem>>, vector<1x32x8xf32>
    %93 = vector.shape_cast %92 : vector<1x32x8xf32> to vector<32x8xf32>
    %cst_80 = arith.constant dense<0.000000e+00> : vector<8x8xf32>
    %94 = tpu.matmul %77, %93, %cst_80 {dimension_numbers = #tpu.dot_dimension_numbers<[1], [0], [0], [1], [0, 0, 1, 1], [], []>} : vector<8x32xf32>, vector<32x8xf32>, vector<8x8xf32> -> vector<8x8xf32>
    %c1_81 = arith.constant 1 : index
    %c0_82 = arith.constant 0 : index
    %c0_83 = arith.constant 0 : index
    %95 = vector.load %arg3[%c1_81, %c0_82, %c0_83] : memref<4x1x8xf32, #tpu.memory_space<vmem>>, vector<1x1x8xf32>
    %96 = vector.shape_cast %95 : vector<1x1x8xf32> to vector<1x8xf32>
    %97 = vector.broadcast %96 : vector<1x8xf32> to vector<8x8xf32>
    %98 = arith.addf %94, %97 : vector<8x8xf32>
    %99 = vector.extract_strided_slice %14 {offsets = [8, 0], sizes = [8, 8], strides = [1, 1]} : vector<32x8xf32> to vector<8x8xf32>
    %cst_84 = arith.constant dense<0.000000e+00> : vector<8x8xf32>
    %100 = tpu.matmul %99, %98, %cst_84 {dimension_numbers = #tpu.dot_dimension_numbers<[1], [0], [0], [1], [0, 0, 1, 1], [], []>} : vector<8x8xf32>, vector<8x8xf32>, vector<8x8xf32> -> vector<8x8xf32>
    %c1_85 = arith.constant 1 : index
    %c0_86 = arith.constant 0 : index
    %c0_87 = arith.constant 0 : index
    %101 = vector.load %arg6[%c1_85, %c0_86, %c0_87] : memref<4x8x32xf32, #tpu.memory_space<vmem>>, vector<1x8x32xf32>
    %102 = vector.shape_cast %101 : vector<1x8x32xf32> to vector<8x32xf32>
    %cst_88 = arith.constant dense<0.000000e+00> : vector<8x32xf32>
    %103 = tpu.matmul %100, %102, %cst_88 {dimension_numbers = #tpu.dot_dimension_numbers<[1], [0], [0], [1], [0, 0, 1, 1], [], []>} : vector<8x8xf32>, vector<8x32xf32>, vector<8x32xf32> -> vector<8x32xf32>
    %104 = arith.addf %91, %103 : vector<8x32xf32>
    %c2_89 = arith.constant 2 : index
    %c0_90 = arith.constant 0 : index
    %c0_91 = arith.constant 0 : index
    %105 = vector.load %arg2[%c2_89, %c0_90, %c0_91] : memref<4x32x8xf32, #tpu.memory_space<vmem>>, vector<1x32x8xf32>
    %106 = vector.shape_cast %105 : vector<1x32x8xf32> to vector<32x8xf32>
    %cst_92 = arith.constant dense<0.000000e+00> : vector<8x8xf32>
    %107 = tpu.matmul %77, %106, %cst_92 {dimension_numbers = #tpu.dot_dimension_numbers<[1], [0], [0], [1], [0, 0, 1, 1], [], []>} : vector<8x32xf32>, vector<32x8xf32>, vector<8x8xf32> -> vector<8x8xf32>
    %c2_93 = arith.constant 2 : index
    %c0_94 = arith.constant 0 : index
    %c0_95 = arith.constant 0 : index
    %108 = vector.load %arg3[%c2_93, %c0_94, %c0_95] : memref<4x1x8xf32, #tpu.memory_space<vmem>>, vector<1x1x8xf32>
    %109 = vector.shape_cast %108 : vector<1x1x8xf32> to vector<1x8xf32>
    %110 = vector.broadcast %109 : vector<1x8xf32> to vector<8x8xf32>
    %111 = arith.addf %107, %110 : vector<8x8xf32>
    %112 = vector.extract_strided_slice %14 {offsets = [16, 0], sizes = [8, 8], strides = [1, 1]} : vector<32x8xf32> to vector<8x8xf32>
    %cst_96 = arith.constant dense<0.000000e+00> : vector<8x8xf32>
    %113 = tpu.matmul %112, %111, %cst_96 {dimension_numbers = #tpu.dot_dimension_numbers<[1], [0], [0], [1], [0, 0, 1, 1], [], []>} : vector<8x8xf32>, vector<8x8xf32>, vector<8x8xf32> -> vector<8x8xf32>
    %c2_97 = arith.constant 2 : index
    %c0_98 = arith.constant 0 : index
    %c0_99 = arith.constant 0 : index
    %114 = vector.load %arg6[%c2_97, %c0_98, %c0_99] : memref<4x8x32xf32, #tpu.memory_space<vmem>>, vector<1x8x32xf32>
    %115 = vector.shape_cast %114 : vector<1x8x32xf32> to vector<8x32xf32>
    %cst_100 = arith.constant dense<0.000000e+00> : vector<8x32xf32>
    %116 = tpu.matmul %113, %115, %cst_100 {dimension_numbers = #tpu.dot_dimension_numbers<[1], [0], [0], [1], [0, 0, 1, 1], [], []>} : vector<8x8xf32>, vector<8x32xf32>, vector<8x32xf32> -> vector<8x32xf32>
    %117 = arith.addf %104, %116 : vector<8x32xf32>
    %c3_101 = arith.constant 3 : index
    %c0_102 = arith.constant 0 : index
    %c0_103 = arith.constant 0 : index
    %118 = vector.load %arg2[%c3_101, %c0_102, %c0_103] : memref<4x32x8xf32, #tpu.memory_space<vmem>>, vector<1x32x8xf32>
    %119 = vector.shape_cast %118 : vector<1x32x8xf32> to vector<32x8xf32>
    %cst_104 = arith.constant dense<0.000000e+00> : vector<8x8xf32>
    %120 = tpu.matmul %77, %119, %cst_104 {dimension_numbers = #tpu.dot_dimension_numbers<[1], [0], [0], [1], [0, 0, 1, 1], [], []>} : vector<8x32xf32>, vector<32x8xf32>, vector<8x8xf32> -> vector<8x8xf32>
    %c3_105 = arith.constant 3 : index
    %c0_106 = arith.constant 0 : index
    %c0_107 = arith.constant 0 : index
    %121 = vector.load %arg3[%c3_105, %c0_106, %c0_107] : memref<4x1x8xf32, #tpu.memory_space<vmem>>, vector<1x1x8xf32>
    %122 = vector.shape_cast %121 : vector<1x1x8xf32> to vector<1x8xf32>
    %123 = vector.broadcast %122 : vector<1x8xf32> to vector<8x8xf32>
    %124 = arith.addf %120, %123 : vector<8x8xf32>
    %125 = vector.extract_strided_slice %14 {offsets = [24, 0], sizes = [8, 8], strides = [1, 1]} : vector<32x8xf32> to vector<8x8xf32>
    %cst_108 = arith.constant dense<0.000000e+00> : vector<8x8xf32>
    %126 = tpu.matmul %125, %124, %cst_108 {dimension_numbers = #tpu.dot_dimension_numbers<[1], [0], [0], [1], [0, 0, 1, 1], [], []>} : vector<8x8xf32>, vector<8x8xf32>, vector<8x8xf32> -> vector<8x8xf32>
    %c3_109 = arith.constant 3 : index
    %c0_110 = arith.constant 0 : index
    %c0_111 = arith.constant 0 : index
    %127 = vector.load %arg6[%c3_109, %c0_110, %c0_111] : memref<4x8x32xf32, #tpu.memory_space<vmem>>, vector<1x8x32xf32>
    %128 = vector.shape_cast %127 : vector<1x8x32xf32> to vector<8x32xf32>
    %cst_112 = arith.constant dense<0.000000e+00> : vector<8x32xf32>
    %129 = tpu.matmul %126, %128, %cst_112 {dimension_numbers = #tpu.dot_dimension_numbers<[1], [0], [0], [1], [0, 0, 1, 1], [], []>} : vector<8x8xf32>, vector<8x32xf32>, vector<8x32xf32> -> vector<8x32xf32>
    %130 = arith.addf %117, %129 : vector<8x32xf32>
    %131 = vector.broadcast %15 : vector<1x32xf32> to vector<8x32xf32>
    %132 = arith.addf %130, %131 : vector<8x32xf32>
    %c0_113 = arith.constant 0 : index
    %c1_114 = arith.constant 1 : index
    %c0_115 = arith.constant 0 : index
    %133 = vector.load %arg8[%c0_113, %c1_114, %c0_115] : memref<8x2x32xf32, #tpu.memory_space<vmem>>, vector<8x1x32xf32>
    %134 = vector.shape_cast %133 : vector<8x1x32xf32> to vector<8x32xf32>
    %135 = vector.shape_cast %132 : vector<8x32xf32> to vector<8x1x32xf32>
    tpu.vector_store %arg8[%c0_113, %c1_114, %c0_115], %135 {strides = array<i32>} : memref<8x2x32xf32, #tpu.memory_space<vmem>>, vector<8x1x32xf32>,
    return
  }
  func.func @transform_0(%arg0: i32) -> (i32, i32, i32) {
    %c0_i32 = arith.constant 0 : i32
    %c0_i32_0 = arith.constant 0 : i32
    %c0_i32_1 = arith.constant 0 : i32
    %c0_i32_2 = arith.constant 0 : i32
    return %c0_i32, %c0_i32_0, %c0_i32_1 : i32, i32, i32
  }
  func.func @transform_1(%arg0: i32) -> (i32, i32, i32) {
    %c0_i32 = arith.constant 0 : i32
    %c0_i32_0 = arith.constant 0 : i32
    %c0_i32_1 = arith.constant 0 : i32
    %c0_i32_2 = arith.constant 0 : i32
    return %c0_i32, %c0_i32_0, %c0_i32_1 : i32, i32, i32
  }
  func.func @transform_2(%arg0: i32) -> (i32, i32, i32) {
    %c0_i32 = arith.constant 0 : i32
    %c0_i32_0 = arith.constant 0 : i32
    %c0_i32_1 = arith.constant 0 : i32
    %c0_i32_2 = arith.constant 0 : i32
    return %c0_i32, %c0_i32_0, %c0_i32_1 : i32, i32, i32
  }
  func.func @transform_3(%arg0: i32) -> (i32, i32, i32, i32) {
    %c0_i32 = arith.constant 0 : i32
    %c0_i32_0 = arith.constant 0 : i32
    %c0_i32_1 = arith.constant 0 : i32
    %c0_i32_2 = arith.constant 0 : i32
    return %c0_i32, %c0_i32_0, %arg0, %c0_i32_1 : i32, i32, i32, i32
  }
  func.func @transform_4(%arg0: i32) -> (i32, i32) {
    %c0_i32 = arith.constant 0 : i32
    %c0_i32_0 = arith.constant 0 : i32
    %c0_i32_1 = arith.constant 0 : i32
    return %c0_i32, %c0_i32_0 : i32, i32
  }
  func.func @transform_5(%arg0: i32) -> (i32, i32, i32) {
    %c0_i32 = arith.constant 0 : i32
    %c0_i32_0 = arith.constant 0 : i32
    %c0_i32_1 = arith.constant 0 : i32
    %c0_i32_2 = arith.constant 0 : i32
    return %c0_i32, %c0_i32_0, %c0_i32_1 : i32, i32, i32
  }
  func.func @transform_6(%arg0: i32) -> (i32, i32) {
    %c0_i32 = arith.constant 0 : i32
    %c0_i32_0 = arith.constant 0 : i32
    %c0_i32_1 = arith.constant 0 : i32
    return %c0_i32, %c0_i32_0 : i32, i32
  }
  func.func @transform_7(%arg0: i32) -> (i32, i32, i32) {
    %c0_i32 = arith.constant 0 : i32
    %c0_i32_0 = arith.constant 0 : i32
    %c0_i32_1 = arith.constant 0 : i32
    return %arg0, %c0_i32, %c0_i32_0 : i32, i32, i32
  }
}

</mosaic_0001>

<bundles_post_ra>
// kernel: _lambda_.1
= control target key start
LH: loop header
LB: loop body
LE: loop exit
PB: predicated region body
PF: predicated region fallthrough
CT: control target
= control target key end

     0   :  { %12 = vsyncpa [#allocation3], 0  ;;  %s3245_s0 = inlined_call_operand.hbm [shape: f32[8,2,32], index: 0, kind: input, shape index: {}]   ;;  %s3246_s1 = inlined_call_operand.hbm [shape: f32[4,32,8], index: 1, kind: input, shape index: {}]   ;;  %s3247_s2 = inlined_call_operand.vmem [shape: f32[4,1,8], index: 2, kind: input, shape index: {}]   ;;  %s3248_s3 = inlined_call_operand.hbm [shape: f32[1,4,256,8], index: 3, kind: input, shape index: {}]   ;;  %s3249_s4 = inlined_call_operand.hbm [shape: f32[256,8], index: 4, kind: input, shape index: {}]   ;;  %s3250_s5 = inlined_call_operand.hbm [shape: f32[4,8,32], index: 5, kind: input, shape index: {}]   ;;  %s3251_s6 = inlined_call_operand.vmem [shape: f32[1,32], index: 6, kind: input, shape index: {}]   ;;  %s3252_s7 = inlined_call_operand.hbm [shape: f32[8,2,32], index: 7, kind: output, shape index: {}]  }
   0x1   :  { %13 = vsyncpa [#allocation6], 0 }
   0x2   :  { %14 = vsyncpa [#allocation9], 0 }
   0x3   :  { %15 = vsyncpa [#allocation4], 0  ;;  %s2817_s24 = smov [#allocation5]   ;;  %s2677_s28 = scalar_lea.hbm %s3246_s1, 2048 }
   0x4   :  { %s33_s25 = sshll.u32 %s2817_s24, 4  ;;  %p2678_p0 = scmp.ne.s32.totalorder %s3246_s1, %s2677_s28  ;;  %s34_s25 = int_to_ptr.vmem [resolvable:$true] %s33_s25 }
   0x5   :  { %p2681_p1 = scmp.lt.u32.totalorder %s2677_s28, %s3246_s1 }
   0x7   :  { %p2683_p2 = pnand %p2681_p1, %p2678_p0 }
   0x9   :  { %2686 = shalt.err (!%p2683_p2)
}
   0xa   :  { %s2687_s10 = scalar_lea.vmem %s34_s25, 2048  ;;  %p2692_p4 = scmp.lt.s32.totalorder %s34_s25, %s34_s25 }
   0xb   :  { %p2688_p3 = scmp.ne.s32.totalorder %s34_s25, %s2687_s10  ;;  %p2693_p5 = scmp.lt.s32.totalorder %s2687_s10, %s2687_s10 }
   0xd   :  { %p2694_p6 = por %p2693_p5, %p2692_p4 }
   0xf   :  { %p2695_p7 = pnand %p2694_p6, %p2688_p3 }
  0x11   :  { %2698 = shalt.err (!%p2695_p7)
}
  0x12   :  { %s2818_s11 = smov 128   ;;  %s2819_s12 = smov 8  }
  0x13   :  { %39 = dma.hbm_to_vmem [thread:$0]  %s3246_s1, 2048, %s34_s25, [#allocation6], %s2818_s11, %s2818_s11, %s2819_s12  }
  0x14   :  { %s2820_s15 = smov [#allocation8]   ;;  %s2821_s17 = smov [#allocation2]  }
  0x15   :  { %s60_s16 = sshll.u32 %s2820_s15, 4  ;;  %s21_s18 = sshll.u32 %s2821_s17, 4  ;;  %s61_s16 = int_to_ptr.vmem [resolvable:$true] %s60_s16  ;;  %s22_s18 = int_to_ptr.vmem [resolvable:$true] %s21_s18 }
  0x16   :  { %s2699_s21 = scalar_lea.hbm %s3249_s4, 128  ;;  %s2701_s27 = scalar_lea.hbm %s3249_s4, 4096 }
  0x17   :  { %p2700_p8 = scmp.ne.s32.totalorder %s3249_s4, %s2699_s21  ;;  %p2702_p9 = scmp.lt.u32.totalorder %s2701_s27, %s2699_s21 }
  0x18   :  { %p2703_p10 = scmp.lt.u32.totalorder %s2699_s21, %s3249_s4 }
  0x1a   :  { %p2704_p11 = por %p2703_p10, %p2702_p9 }
  0x1c   :  { %p2705_p12 = pnand %p2704_p11, %p2700_p8 }
  0x1e   :  { %2708 = shalt.err (!%p2705_p12)
}
  0x1f   :  { %s2709_s25 = scalar_lea.vmem %s61_s16, 128  ;;  %p2714_p0 = scmp.lt.s32.totalorder %s61_s16, %s61_s16 }
  0x20   :  { %p2710_p13 = scmp.ne.s32.totalorder %s61_s16, %s2709_s25  ;;  %p2715_p1 = scmp.lt.s32.totalorder %s2709_s25, %s2709_s25 }
  0x22   :  { %p2716_p2 = por %p2715_p1, %p2714_p0 }
  0x24   :  { %p2717_p3 = pnand %p2716_p2, %p2710_p13 }
  0x26   :  { %2720 = shalt.err (!%p2717_p3)
}
  0x27   :  { %63 = dma.hbm_to_vmem [thread:$0]  %s3249_s4, 128, %s61_s16, [#allocation9]  }
  0x28   :  { %s2721_s10 = scalar_lea.hbm %s3245_s0, 256 }
  0x29   :  { %p2722_p4 = scmp.ne.s32.totalorder %s3245_s0, %s2721_s10  ;;  %p2725_p5 = scmp.lt.u32.totalorder %s2721_s10, %s3245_s0 }
  0x2b   :  { %p2727_p6 = pnand %p2725_p5, %p2722_p4 }
  0x2d   :  { %2730 = shalt.err (!%p2727_p6)
}
  0x2e   :  { %s2731_s19 = scalar_lea.vmem %s22_s18, 256  ;;  %p2736_p8 = scmp.lt.s32.totalorder %s22_s18, %s22_s18 }
  0x2f   :  { %p2732_p7 = scmp.ne.s32.totalorder %s22_s18, %s2731_s19  ;;  %p2737_p9 = scmp.lt.s32.totalorder %s2731_s19, %s2731_s19 }
  0x31   :  { %p2738_p10 = por %p2737_p9, %p2736_p8 }
  0x33   :  { %p2739_p11 = pnand %p2738_p10, %p2732_p7 }
  0x35   :  { %2742 = shalt.err (!%p2739_p11)
}
  0x36   :  { %s2822_s4 = smov 32   ;;  %s2823_s16 = smov 2  }
  0x37   :  { %27 = dma.hbm_to_vmem [thread:$0]  %s3245_s0, 256, %s22_s18, [#allocation3], %s2822_s4, %s2822_s4, %s2823_s16  }
  0x38   :  { %s2824_s22 = smov [#allocation7]   ;;  %s2743_s27 = scalar_lea.hbm %s3248_s3, 512 }
  0x39   :  { %s47_s23 = sshll.u32 %s2824_s22, 4  ;;  %p2744_p12 = scmp.ne.s32.totalorder %s3248_s3, %s2743_s27  ;;  %s48_s23 = int_to_ptr.vmem [resolvable:$true] %s47_s23 }
  0x3a   :  { %s2745_s30 = scalar_lea.hbm %s3248_s3, 16384  ;;  %p2747_p0 = scmp.lt.u32.totalorder %s2743_s27, %s3248_s3 }
  0x3b   :  { %p2746_p13 = scmp.lt.u32.totalorder %s2745_s30, %s2743_s27 }
  0x3d   :  { %p2748_p1 = por %p2747_p0, %p2746_p13 }
  0x3f   :  { %p2749_p2 = pnand %p2748_p1, %p2744_p12 }
  0x41   :  { %2752 = shalt.err (!%p2749_p2)
}
  0x42   :  { %s2753_s0 = scalar_lea.vmem %s48_s23, 512  ;;  %p2758_p4 = scmp.lt.s32.totalorder %s48_s23, %s48_s23 }
  0x43   :  { %p2754_p3 = scmp.ne.s32.totalorder %s48_s23, %s2753_s0  ;;  %p2759_p5 = scmp.lt.s32.totalorder %s2753_s0, %s2753_s0 }
  0x45   :  { %p2760_p6 = por %p2759_p5, %p2758_p4 }
  0x47   :  { %p2761_p7 = pnand %p2760_p6, %p2754_p3 }
  0x49   :  { %2764 = shalt.err (!%p2761_p7)
}
  0x4a   :  { %s2825_s18 = smov 4096   ;;  %s2826_s14 = smov [#allocation10]  }
  0x4b   :  { %53 = dma.hbm_to_vmem [thread:$0]  %s3248_s3, 512, %s48_s23, [#allocation6], %s2825_s18, %s2818_s11, %s2819_s12  }
  0x4c   :  { %s69_s15 = sshll.u32 %s2826_s14, 4  ;;  %s2765_s20 = scalar_lea.hbm %s3250_s5, 512  ;;  %s70_s15 = int_to_ptr.vmem [resolvable:$true] %s69_s15 }
  0x4d   :  { %p2766_p8 = scmp.ne.s32.totalorder %s3250_s5, %s2765_s20  ;;  %p2769_p9 = scmp.lt.u32.totalorder %s2765_s20, %s3250_s5 }
  0x4f   :  { %p2771_p10 = pnand %p2769_p9, %p2766_p8 }
  0x51   :  { %2774 = shalt.err (!%p2771_p10)
}
  0x52   :  { %s2775_s27 = scalar_lea.vmem %s70_s15, 512  ;;  %p2780_p12 = scmp.lt.s32.totalorder %s70_s15, %s70_s15 }
  0x53   :  { %p2776_p11 = scmp.ne.s32.totalorder %s70_s15, %s2775_s27  ;;  %p2781_p13 = scmp.lt.s32.totalorder %s2775_s27, %s2775_s27 }
  0x55   :  { %p2782_p0 = por %p2781_p13, %p2780_p12 }
  0x57   :  { %p2783_p1 = pnand %p2782_p0, %p2776_p11 }
  0x59   :  { %2786 = shalt.err (!%p2783_p1)
}
  0x5a   :  { %75 = dma.hbm_to_vmem [thread:$0]  %s3250_s5, 512, %s70_s15, [#allocation9], %s2818_s11, %s2818_s11, %s2819_s12  }
  0x5b   :  { %2809 = dma.done.wait [#allocation3], 256  }
  0x5c   :  { %2810 = vsyncadd [#allocation3], 4294967040 }
  0x5d   :  { %2811 = dma.done.wait [#allocation6], 2560  }
  0x5e   :  { %2812 = vsyncadd [#allocation6], 4294964736 }
  0x5f   :  { %2813 = dma.done.wait [#allocation9], 640  }
  0x60   :  { %2814 = vsyncadd [#allocation9], 4294966656  ;;  %vm98_vm0 = vcmask 64512   ;;  %v97_v0 = vld [vmem:[#allocation8] sm:$0xff]  ;;  %v94_v2 = vld [vmem:[#allocation7 + $0x8] sm:$0xff]  ;;  %v2827_v8 = vmov 0.0|0.0  }
  0x61   :  { %v93_v1 = vld [vmem:[#allocation7] sm:$0xff]  ;;  %2422 = vmatprep.subr.msk.mxu0 %vm98_vm0, %v97_v0  ;;  %v95_v3 = vld [vmem:[#allocation7 + $0x10] sm:$0xff]  ;;  %v96_v4 = vld [vmem:[#allocation7 + $0x18] sm:$0xff]  ;;  %2598 = vmatprep.subr.bf16.mxu1 %v2827_v8  ;;  %vm2828_vm1 = vmmov 0   ;;  %v2829_v11 = vmov 0.0   ;;  %vm272_vm2 = vcmask 1041409  }
  0x62   :  { %2424 = vmatprep.mubr.msk.f32.mxu0 %vm98_vm0, %v93_v1  ;;  %2423 = vmatpush3.xpose.msk.msra.mxu0 %vm98_vm0, %v97_v0  ;;  %v252_v5 = vld [vmem:[#allocation5] sm:$0xff]  ;;  %v253_v6 = vld [vmem:[#allocation5 + $0x8] sm:$0xff]  ;;  %v254_v7 = vld [vmem:[#allocation5 + $0x10] sm:$0xff]  ;;  %vm275_vm3 = vcmask 1042434   ;;  %vm278_vm4 = vcmask 1043459   ;;  %vm281_vm5 = vcmask 1044484  }
  0x63   :  { %v2956_v9 = vpack.c.bf16 %v253_v6, %v252_v5  ;;  %v255_v10 = vld [vmem:[#allocation5 + $0x18] sm:$0xff]  ;;  %2438 = vmatprep.mubr.msk.f32.mxu1 %vm2828_vm1, %v2829_v11  ;;  %v245_v12 = vld [vmem:[#allocation2 + $0x2] sm:$0x1]  ;;  %v246_v13 = vld [vmem:[#allocation2 + $0x4] sm:$0x1]  ;;  %2441 = vmatprep.subr.mxu0 %v2829_v11  ;;  %vm284_vm6 = vcmask 1045509  }
  0x64   :  { %v247_v14 = vld [vmem:[#allocation2 + $0x6] sm:$0x1]  ;;  %v248_v15 = vld [vmem:[#allocation2 + $0x8] sm:$0x1]  ;;  %v2964_v16 = vpack.c.bf16 %v255_v10, %v254_v7  ;;  %v244_v17 = vld [vmem:[#allocation2] sm:$0x1] }
  0x65   :  { %2425 = vmatmul.mubr.msk.f32.vlgmr.msra.gmra.mrb[0].mxu0 %vm98_vm0, %v94_v2  ;;  %2600 = vmatpush3.bf16.msra.mxu1 %v2956_v9  ;;  %v249_v18 = vld [vmem:[#allocation2 + $0xa] sm:$0x1]  ;;  %v250_v19 = vld [vmem:[#allocation2 + $0xc] sm:$0x1]  ;;  %v271_v20 = vrot.slane %v245_v12, 7  ;;  %v274_v21 = vrot.slane %v246_v13, 6 }
  0x66   :  { %2427 = vmatprep.mubr.msk.f32.mxu0 %vm98_vm0, %v95_v3  ;;  %2601 = vmatprep.subr.bf16.mxu1 %v2827_v8  ;;  %v277_v22 = vrot.slane %v247_v14, 5  ;;  %v251_v23 = vld [vmem:[#allocation2 + $0xe] sm:$0x1]  ;;  %v280_v24 = vrot.slane %v248_v15, 4  ;;  %v283_v26 = vrot.slane %v249_v18, 3  ;;  %v286_v28 = vrot.slane %v250_v19, 2 }
  0x67   :  { %v273_v25 = vsel %vm272_vm2, %v271_v20, %v244_v17  ;;  %v440_v29 = vld [vmem:[#allocation5 + $0x20] sm:$0xff]  ;;  %v441_v30 = vld [vmem:[#allocation5 + $0x28] sm:$0xff]  ;;  %vm287_vm7 = vcmask 1046534   ;;  %v289_v32 = vrot.slane %v251_v23, 1  ;;  %vm290_vm8 = vcmask 1047559   ;;  %v442_v37 = vld [vmem:[#allocation5 + $0x30] sm:$0xff] }
  0x68   :  { %v276_v27 = vsel %vm275_vm3, %v274_v21, %v273_v25  ;;  %vm292_vm9 = vcmask 261120   ;;  %v2974_v35 = vpack.c.bf16 %v441_v30, %v440_v29  ;;  %v443_v38 = vld [vmem:[#allocation5 + $0x38] sm:$0xff]  ;;  %v3011_v6 = vld [vmem:[%s3247_s2] ss:$0 sm:$0xff]  ;;  %v3018_v17 = vld [vmem:[%s3247_s2 + $0x1] ss:$0 sm:$0xff] }
  0x69   :  { %2428 = vmatmul.mubr.msk.f32.gmra.mrb[2].mxu0 %vm98_vm0, %v96_v4  ;;  %2603 = vmatpush3.bf16.msra.mxu1 %v2964_v16  ;;  %v279_v31 = vsel %vm278_vm4, %v277_v22, %v276_v27  ;;  %v2983_v40 = vpack.c.bf16 %v443_v38, %v442_v37  ;;  %v3034_v23 = vld [vmem:[#allocation10] sm:$0xff]  ;;  %v744_v25 = vld [vmem:[#allocation5 + $0x40] sm:$0xff]  ;;  %v746_v30 = vld [vmem:[#allocation5 + $0x50] sm:$0xff]  ;;  %vm1272_vm10 = vcmask 253952  }
  0x6a   :  { %2443 = vmatprep.mubr.msk.f32.mxu0 %vm2828_vm1, %v2829_v11  ;;  %2604 = vmatprep.subr.bf16.mxu1 %v2827_v8  ;;  %v282_v33 = vsel %vm281_vm5, %v280_v24, %v279_v31  ;;  %v3037_v24 = vld [vmem:[#allocation10 + $0x8] sm:$0xff]  ;;  %v747_v31 = vld [vmem:[#allocation5 + $0x58] sm:$0xff]  ;;  %v977_v37 = vld [vmem:[#allocation5 + $0x68] sm:$0xff] }
  0x6b   :  { %v285_v34 = vsel %vm284_vm6, %v283_v26, %v282_v33  ;;  %v745_v26 = vld [vmem:[#allocation5 + $0x48] sm:$0xff] }
  0x6c   :  { %v288_v36 = vsel %vm287_vm7, %v286_v28, %v285_v34  ;;  %v3043_v29 = vpack.c.bf16 %v745_v26, %v744_v25  ;;  %v3049_v34 = vpack.c.bf16 %v747_v31, %v746_v30  ;;  %v3110_v26 = vld [vmem:[%s3247_s2 + $0x3] ss:$0 sm:$0xff] }
  0x6d   :  { %v2978_v39 = vsel %vm290_vm8, %v289_v32, %v288_v36  ;;  %v976_v36 = vld [vmem:[#allocation5 + $0x60] sm:$0xff] }
  0x6e   :  { %2439 = vmatmul.mubr.msk.f32.vlgmr.msra.gmra.mrb[0].mxu1 %vm292_vm9, %v2978_v39  ;;  %v3060_v38 = vpack.c.bf16 %v977_v37, %v976_v36  ;;  %v3124_v36 = vld [vmem:[#allocation10 + $0x18] sm:$0xff] }
  0x6f   :  { %2606 = vmatpush3.bf16.msra.mxu1 %v2974_v35  ;;  %2454 = vmatprep.mubr.msk.f32.mxu1 %vm2828_vm1, %v2829_v11 }
  0x70   :  { %2607 = vmatprep.subr.bf16.mxu1 %v2827_v8 }
  0x73   :  { %2609 = vmatpush3.bf16.msra.mxu1 %v2983_v40 }
  0x74   :  { %2467 = vmatprep.subr.mxu1 %v2829_v11 }
  0x76   :  { %2455 = vmatmul.mubr.msk.f32.vlgmr.msra.gmra.mrb[2].mxu1 %vm292_vm9, %v2978_v39 }
  0x77   :  { %2469 = vmatprep.mubr.msk.f32.mxu1 %vm2828_vm1, %v2829_v11  ;;  %2468 = vmatpush3.msra.mxu1 %v3034_v23 }
  0x78   :  { %2483 = vmatprep.subr.mxu1 %v2829_v11 }
 0x138   :  { %v2426_v41 = vpop.f32.mrb[0].mxu0 }
 0x139   :  { %v180_v42 = vpop.f32.mrb[1].mxu0  ;;  %v202_v46 = vsel %vm98_vm0, %v2426_v41, -inf }
 0x13a   :  { %v199_v43 = vsel %vm98_vm0, %v180_v42, -inf }
 0x13b   :  { %200 = vmax.xlane.f32.xlu0 %v199_v43 }
 0x13c   :  { %v2429_v44 = vpop.f32.mrb[2].mxu0 }
 0x13d   :  { %v190_v45 = vpop.f32.mrb[3].mxu0  ;;  %v208_v48 = vsel %vm98_vm0, %v2429_v44, -inf }
 0x13e   :  { %v205_v47 = vsel %vm98_vm0, %v190_v45, -inf }
 0x13f   :  { %203 = vmax.xlane.f32.xlu0 %v202_v46 }
 0x141   :  { %v361_v5 = vpop.f32.mrb[0].mxu1 }
 0x142   :  { %v2440_v7 = vpop.f32.mrb[1].mxu1  ;;  %v362_v10 = vadd.f32 %v3011_v6, %v361_v5 }
 0x143   :  { %206 = vmax.xlane.f32.xlu0 %v205_v47 }
 0x144   :  { %2442 = vmatpush3.msra.mxu0 %v362_v10  ;;  %v1288_v10 = vld [vmem:[#allocation2 + $0xf] sm:$0x1] }
 0x145   :  { %2457 = vmatprep.subr.mxu0 %v2829_v11 }
 0x147   :  { %209 = vmax.xlane.f32.xlu0 %v208_v48 }
 0x149   :  { %v518_v12 = vpop.f32.mrb[2].mxu1 }
 0x14a   :  { %v2456_v13 = vpop.f32.mrb[3].mxu1  ;;  %v519_v19 = vadd.f32 %v3018_v17, %v518_v12 }
 0x1c8   :  { %v201_v49 = vpop.xlane.xlu0 %200 }
 0x1c9   :  { %v211_v50 = vsub.f32 %v180_v42, %v201_v49  ;;  %v979_v42 = vld [vmem:[#allocation5 + $0x78] sm:$0xff] }
 0x1cb   :  { %v215_v51 = vmul.f32 1.442695, %v211_v50 }
 0x1cc   :  { %v204_v52 = vpop.xlane.xlu0 %203 }
 0x1cd   :  { %2661 = vpow2.f32 %v215_v51  ;;  %v212_v53 = vsub.f32 %v2426_v41, %v204_v52  ;;  %v978_v41 = vld [vmem:[#allocation5 + $0x70] sm:$0xff] }
 0x1ce   :  { %v3064_v43 = vpack.c.bf16 %v979_v42, %v978_v41 }
 0x1cf   :  { %v217_v54 = vmul.f32 1.442695, %v212_v53  ;;  %v1282_v53 = vld [vmem:[#allocation2 + $0x3] sm:$0x1] }
 0x1d0   :  { %v207_v55 = vpop.xlane.xlu0 %206 }
 0x1d1   :  { %2663 = vpow2.f32 %v217_v54  ;;  %v213_v56 = vsub.f32 %v190_v45, %v207_v55  ;;  %v1283_v54 = vld [vmem:[#allocation2 + $0x5] sm:$0x1]  ;;  %v1308_v55 = vrot.slane %v1282_v53, 7 }
 0x1d3   :  { %v219_v57 = vmul.f32 1.442695, %v213_v56  ;;  %v1281_v56 = vld [vmem:[#allocation2 + $0x1] sm:$0x1] }
 0x1d4   :  { %v210_v58 = vpop.xlane.xlu0 %209 }
 0x1d5   :  { %2665 = vpow2.f32 %v219_v57  ;;  %v214_v59 = vsub.f32 %v2429_v44, %v210_v58  ;;  %v1284_v57 = vld [vmem:[#allocation2 + $0x7] sm:$0x1]  ;;  %v1310_v58 = vrot.slane %v1283_v54, 6 }
 0x1d7   :  { %v2662_v60 = vpop.eup %2661  ;;  %v221_v61 = vmul.f32 1.442695, %v214_v59  ;;  %v1285_v59 = vld [vmem:[#allocation2 + $0x9] sm:$0x1] }
 0x1d8   :  { %v223_v62 = vsel %vm98_vm0, %v2662_v60, 0.0 }
 0x1d9   :  { %224 = vadd.xlane.f32.xlu1 %v223_v62  ;;  %2667 = vpow2.f32 %v221_v61  ;;  %v1312_v61 = vrot.slane %v1284_v57, 5  ;;  %v1286_v62 = vld [vmem:[#allocation2 + $0xb] sm:$0x1] }
 0x1da   :  { %v1316_v5 = vrot.slane %v1286_v62, 3 }
 0x1db   :  { %v2664_v63 = vpop.eup %2663 }
 0x1dc   :  { %v226_v0 = vsel %vm98_vm0, %v2664_v63, 0.0 }
 0x1dd   :  { %227 = vadd.xlane.f32.xlu1 %v226_v0  ;;  %v1314_v0 = vrot.slane %v1285_v59, 4 }
 0x1df   :  { %v3000_v1 = vpop.eup %2665 }
 0x1e0   :  { %v229_v2 = vsel %vm98_vm0, %v3000_v1, 0.0 }
 0x1e1   :  { %230 = vadd.xlane.f32.xlu1 %v229_v2  ;;  %v1287_v2 = vld [vmem:[#allocation2 + $0xd] sm:$0x1] }
 0x1e2   :  { %v1318_v13 = vrot.slane %v1287_v2, 2 }
 0x1e3   :  { %v3004_v3 = vpop.eup %2667 }
 0x1e4   :  { %v232_v4 = vsel %vm98_vm0, %v3004_v3, 0.0 }
 0x1e5   :  { %233 = vadd.xlane.f32.xlu1 %v232_v4 }
 0x266   :  { %v225_v14 = vpop.xlane.xlu1 %224 }
 0x267   :  { %2669 = vrcp.f32 %v225_v14 }
 0x26a   :  { %v228_v15 = vpop.xlane.xlu1 %227 }
 0x26b   :  { %2671 = vrcp.f32 %v228_v15 }
 0x26e   :  { %v231_v44 = vpop.xlane.xlu1 %230 }
 0x26f   :  { %2673 = vrcp.f32 %v231_v44 }
 0x271   :  { %v2670_v18 = vpop.eup %2669 }
 0x272   :  { %v3021_v20 = vmul.f32 %v2670_v18, %v2662_v60  ;;  %v1309_v60 = vsel %vm272_vm2, %v1308_v55, %v1281_v56  ;;  %v1320_v18 = vrot.slane %v1288_v10, 1  ;;  %v234_v25 = vpop.xlane.xlu1 %233 }
 0x273   :  { %2675 = vrcp.f32 %v234_v25 }
 0x274   :  { %2444 = vmatmul.mubr.msk.f32.vlgmr.msra.gmra.mrb[4].mxu0 %vm98_vm0, %v3021_v20 }
 0x275   :  { %v2672_v21 = vpop.eup %2671  ;;  %2458 = vmatpush3.msra.mxu0 %v519_v19  ;;  %2459 = vmatprep.mubr.msk.f32.mxu0 %vm2828_vm1, %v2829_v11 }
 0x276   :  { %v3027_v22 = vmul.f32 %v2672_v21, %v2664_v63  ;;  %2462 = vmatprep.subr.mxu0 %v2829_v11  ;;  %v1311_v63 = vsel %vm275_vm3, %v1310_v58, %v1309_v60 }
 0x277   :  { %v1313_v4 = vsel %vm278_vm4, %v1312_v61, %v1311_v63 }
 0x278   :  { %2460 = vmatmul.mubr.msk.f32.vlgmr.msra.gmra.mrb[6].mxu0 %vm98_vm0, %v3027_v22  ;;  %v1315_v12 = vsel %vm281_vm5, %v1314_v0, %v1313_v4 }
 0x279   :  { %2464 = vmatprep.mubr.msk.f32.mxu0 %vm2828_vm1, %v2829_v11  ;;  %2463 = vmatpush3.msra.mxu0 %v3037_v24  ;;  %v1317_v15 = vsel %vm284_vm6, %v1316_v5, %v1315_v12 }
 0x27a   :  { %2610 = vmatprep.subr.bf16.mxu0 %v2827_v8  ;;  %v1319_v19 = vsel %vm287_vm7, %v1318_v13, %v1317_v15 }
 0x27b   :  { %v3101_v21 = vsel %vm290_vm8, %v1320_v18, %v1319_v19 }
 0x347   :  { %v434_v27 = vpop.f32.mrb[4].mxu0 }
 0x348   :  { %v2445_v28 = vpop.f32.mrb[5].mxu0  ;;  %2470 = vmatmul.mubr.msk.f32.vlgmr.msra.gmra.mrb[4].mxu1 %vm98_vm0, %v434_v27 }
 0x349   :  { %2485 = vmatprep.mubr.msk.f32.mxu1 %vm2828_vm1, %v2829_v11 }
 0x34b   :  { %v591_v32 = vpop.f32.mrb[6].mxu0 }
 0x34c   :  { %v2461_v33 = vpop.f32.mrb[7].mxu0  ;;  %2465 = vmatmul.mubr.msk.f32.vlgmr.msra.gmra.mrb[8].mxu0 %vm98_vm0, %v591_v32 }
 0x34d   :  { %2612 = vmatpush3.bf16.msra.mxu0 %v3043_v29  ;;  %2480 = vmatprep.mubr.msk.f32.mxu0 %vm2828_vm1, %v2829_v11 }
 0x34e   :  { %2613 = vmatprep.subr.bf16.mxu0 %v2827_v8 }
 0x351   :  { %2615 = vmatpush3.bf16.msra.mxu0 %v3049_v34 }
 0x352   :  { %2616 = vmatprep.subr.bf16.mxu0 %v2827_v8 }
 0x354   :  { %2481 = vmatmul.mubr.msk.f32.vlgmr.msra.gmra.mrb[10].mxu0 %vm292_vm9, %v2978_v39 }
 0x355   :  { %2501 = vmatprep.mubr.msk.f32.mxu0 %vm2828_vm1, %v2829_v11  ;;  %2618 = vmatpush3.bf16.msra.mxu0 %v3060_v38 }
 0x356   :  { %2619 = vmatprep.subr.bf16.mxu0 %v2827_v8 }
 0x359   :  { %2621 = vmatpush3.bf16.msra.mxu0 %v3064_v43 }
 0x35a   :  { %2622 = vmatprep.subr.bf16.mxu0 %v2827_v8 }
 0x35c   :  { %2502 = vmatmul.mubr.msk.f32.vlgmr.msra.gmra.mrb[12].mxu0 %vm292_vm9, %v2978_v39  ;;  %v2674_v39 = vpop.eup %2673 }
 0x35d   :  { %2624 = vmatpush3.bf16.msra.mxu0 %v2956_v9  ;;  %2522 = vmatprep.mubr.msk.f32.mxu0 %vm2828_vm1, %v2829_v11  ;;  %v3079_v9 = vld [vmem:[%s3247_s2 + $0x2] ss:$0 sm:$0xff]  ;;  %v2676_v28 = vpop.eup %2675 }
 0x35e   :  { %2625 = vmatprep.subr.bf16.mxu0 %v2827_v8  ;;  %v3117_v32 = vmul.f32 %v2676_v28, %v3004_v3 }
 0x361   :  { %2627 = vmatpush3.bf16.msra.mxu0 %v2964_v16  ;;  %v3083_v16 = vmul.f32 %v2674_v39, %v3000_v1  ;;  %v3092_v1 = vld [vmem:[#allocation10 + $0x10] sm:$0xff] }
 0x362   :  { %2541 = vmatprep.subr.mxu0 %v2829_v11 }
 0x364   :  { %2523 = vmatmul.mubr.msk.f32.vlgmr.msra.gmra.mrb[14].mxu0 %vm292_vm9, %v3101_v21 }
 0x365   :  { %2543 = vmatprep.mubr.msk.f32.mxu0 %vm2828_vm1, %v2829_v11 }
 0x41b   :  { %v739_v45 = vpop.f32.mrb[4].mxu1 }
 0x41c   :  { %v2471_v46 = vpop.f32.mrb[5].mxu1 }
 0x41f   :  { %v666_v47 = vpop.f32.mrb[8].mxu0 }
 0x420   :  { %v740_v48 = vadd.f32 %v739_v45, %v666_v47  ;;  %v2466_v49 = vpop.f32.mrb[9].mxu0 }
 0x427   :  { %v822_v50 = vpop.f32.mrb[10].mxu0 }
 0x428   :  { %v823_v51 = vadd.f32 %v3079_v9, %v822_v50  ;;  %v2482_v52 = vpop.f32.mrb[11].mxu0 }
 0x42a   :  { %2484 = vmatpush3.msra.mxu1 %v823_v51 }
 0x42b   :  { %2486 = vmatmul.mubr.msk.f32.vlgmr.msra.gmra.mrb[6].mxu1 %vm98_vm0, %v3083_v16  ;;  %2488 = vmatprep.subr.mxu1 %v2829_v11 }
 0x42c   :  { %2490 = vmatprep.mubr.msk.f32.mxu1 %vm2828_vm1, %v2829_v11  ;;  %2489 = vmatpush3.msra.mxu1 %v3092_v1 }
 0x42d   :  { %2504 = vmatprep.subr.mxu1 %v2829_v11 }
 0x42f   :  { %v1054_v7 = vpop.f32.mrb[12].mxu0 }
 0x430   :  { %v2503_v14 = vpop.f32.mrb[13].mxu0  ;;  %v1055_v27 = vadd.f32 %v3110_v26, %v1054_v7 }
 0x437   :  { %v1390_v33 = vpop.f32.mrb[14].mxu0 }
 0x438   :  { %v2524_v37 = vpop.f32.mrb[15].mxu0  ;;  %v1391_v44 = vadd.f32 %v3011_v6, %v1390_v33 }
 0x4fe   :  { %v895_v30 = vpop.f32.mrb[6].mxu1 }
 0x4ff   :  { %v2487_v31 = vpop.f32.mrb[7].mxu1  ;;  %2491 = vmatmul.mubr.msk.f32.vlgmr.msra.gmra.mrb[8].mxu1 %vm98_vm0, %v895_v30 }
 0x500   :  { %2505 = vmatpush3.msra.mxu1 %v1055_v27  ;;  %2506 = vmatprep.mubr.msk.f32.mxu1 %vm2828_vm1, %v2829_v11 }
 0x501   :  { %2509 = vmatprep.subr.mxu1 %v2829_v11 }
 0x503   :  { %2507 = vmatmul.mubr.msk.f32.vlgmr.msra.gmra.mrb[10].mxu1 %vm98_vm0, %v3117_v32 }
 0x504   :  { %2511 = vmatprep.mubr.msk.f32.mxu1 %vm2828_vm1, %v2829_v11  ;;  %2510 = vmatpush3.msra.mxu1 %v3124_v36 }
 0x505   :  { %2525 = vmatprep.subr.mxu1 %v2829_v11 }
 0x5d2   :  { %v970_v41 = vpop.f32.mrb[8].mxu1 }
 0x5d3   :  { %v974_v42 = vadd.f32 %v970_v41, %v740_v48  ;;  %v2492_v3 = vpop.f32.mrb[9].mxu1 }
 0x5d6   :  { %v1127_v45 = vpop.f32.mrb[10].mxu1 }
 0x5d7   :  { %v2508_v46 = vpop.f32.mrb[11].mxu1  ;;  %2512 = vmatmul.mubr.msk.f32.vlgmr.msra.gmra.mrb[12].mxu1 %vm98_vm0, %v1127_v45 }
 0x5d8   :  { %2526 = vmatpush3.msra.mxu1 %v1391_v44  ;;  %2527 = vmatprep.mubr.msk.f32.mxu1 %vm2828_vm1, %v2829_v11 }
 0x5d9   :  { %2628 = vmatprep.subr.bf16.mxu1 %v2827_v8 }
 0x5db   :  { %2528 = vmatmul.mubr.msk.f32.vlgmr.msra.gmra.mrb[14].mxu1 %vm98_vm0, %v3021_v20  ;;  %v1219_v20 = vlaneseq }
 0x5dc   :  { %2630 = vmatpush3.bf16.msra.mxu1 %v2974_v35  ;;  %2538 = vmatprep.mubr.msk.f32.mxu1 %vm2828_vm1, %v2829_v11  ;;  %v2830_v35 = vmov 1966171168  }
 0x5dd   :  { %2631 = vmatprep.subr.bf16.mxu1 %v2827_v8  ;;  %v1217_v6 = vunpack.c.l.s4 %v2830_v35  ;;  %v1220_v48 = vshrl.u32 %v1219_v20, 7 }
 0x5df   :  { %v1218_v47 = vunpack.c.0.s8 %v1217_v6 }
 0x5e0   :  { %2633 = vmatpush3.bf16.msra.mxu1 %v2983_v40  ;;  %v3150_v40 = vld [vmem:[%s3251_s6] ss:$0 sm:$0xff]  ;;  %s2831_s6 = smov [#allocation11]  }
 0x5e1   :  { %2551 = vmatprep.subr.mxu1 %v2829_v11  ;;  %v3152_v50 = vsub.s32 %v1218_v47, %v1220_v48  ;;  %s2287_s9 = sshll.u32 %s2831_s6, 4  ;;  %s2288_s9 = int_to_ptr.vmem [resolvable:$true] %s2287_s9 }
 0x5e2   :  { %s2787_s0 = scalar_lea.vmem %s2288_s9, 256  ;;  %p2792_p3 = scmp.lt.s32.totalorder %s2288_s9, %s2288_s9 }
 0x5e3   :  { %2539 = vmatmul.mubr.msk.f32.vlgmr.msra.gmra.mrb[16].mxu1 %vm292_vm9, %v3101_v21  ;;  %p2788_p2 = scmp.ne.s32.totalorder %s2288_s9, %s2787_s0  ;;  %p2793_p4 = scmp.lt.s32.totalorder %s2787_s0, %s2787_s0 }
 0x5e4   :  { %2552 = vmatpush3.msra.mxu1 %v3034_v23  ;;  %2553 = vmatprep.mubr.msk.f32.mxu1 %vm2828_vm1, %v2829_v11 }
 0x5e5   :  { %2567 = vmatprep.subr.mxu1 %v2829_v11  ;;  %p2794_p5 = por %p2793_p4, %p2792_p3 }
 0x5e7   :  { %p2795_p6 = pnand %p2794_p5, %p2788_p2 }
 0x6aa   :  { %v1202_v49 = vpop.f32.mrb[12].mxu1 }
 0x6ab   :  { %v1206_v39 = vadd.f32 %v1202_v49, %v974_v42  ;;  %v2513_v23 = vpop.f32.mrb[13].mxu1 }
 0x6ad   :  { %v1213_v51 = vadd.f32 %v3150_v40, %v1206_v39 }
 0x6ae   :  { %v1460_v52 = vpop.f32.mrb[14].mxu1 }
 0x6af   :  { %v1215_v53 = vcombine.high %v1213_v51, %v1213_v51  ;;  %v1222_v54 = vrot.slane %v1213_v51, %v3152_v50  ;;  %v2529_v55 = vpop.f32.mrb[15].mxu1  ;;  %2554 = vmatmul.mubr.msk.f32.vlgmr.msra.gmra.mrb[18].mxu1 %vm98_vm0, %v1460_v52 }
 0x6b0   :  { %2569 = vmatprep.mubr.msk.f32.mxu1 %vm2828_vm1, %v2829_v11 }
 0x6b1   :  { %v1229_v56 = vrot.slane %v1215_v53, %v3152_v50  ;;  %v1230_v57 = vcombine.high %v1222_v54, %v1222_v54  ;;  %v1238_v58 = vrot.slane %v1222_v54, %v3152_v50 }
 0x6b3   :  { %v1231_v59 = vcombine.high %v1229_v56, %v1229_v56  ;;  %v1245_v60 = vrot.slane %v1229_v56, %v3152_v50  ;;  %v1252_v61 = vrot.slane %v1230_v57, %v3152_v50  ;;  %v1260_v62 = vcombine.high %v1238_v58, %v1238_v58  ;;  %1273 = vst.msk [vmem:[#allocation11] sm:$0x1] %vm1272_vm10, %v1238_v58 }
 0x6b5   :  { %v1259_v63 = vrot.slane %v1231_v59, %v3152_v50  ;;  %v1261_v0 = vcombine.high %v1245_v60, %v1245_v60  ;;  %v1262_v2 = vcombine.high %v1252_v61, %v1252_v61  ;;  %1274 = vst.msk [vmem:[#allocation11 + $0x2] sm:$0x1] %vm1272_vm10, %v1252_v61  ;;  %1275 = vst.msk [vmem:[#allocation11 + $0x4] sm:$0x1] %vm1272_vm10, %v1260_v62 }
 0x6b6   :  { %1277 = vst.msk [vmem:[#allocation11 + $0x8] sm:$0x1] %vm1272_vm10, %v1245_v60  ;;  %v1542_v4 = vpop.f32.mrb[16].mxu1 }
 0x6b7   :  { %v1263_v5 = vcombine.high %v1259_v63, %v1259_v63  ;;  %1276 = vst.msk [vmem:[#allocation11 + $0x6] sm:$0x1] %vm1272_vm10, %v1262_v2  ;;  %1278 = vst.msk [vmem:[#allocation11 + $0xa] sm:$0x1] %vm1272_vm10, %v1259_v63  ;;  %v1543_v7 = vadd.f32 %v3018_v17, %v1542_v4  ;;  %v2540_v10 = vpop.f32.mrb[17].mxu1 }
 0x6b8   :  { %1279 = vst.msk [vmem:[#allocation11 + $0xc] sm:$0x1] %vm1272_vm10, %v1261_v0 }
 0x6b9   :  { %1280 = vst.msk [vmem:[#allocation11 + $0xe] sm:$0x1] %vm1272_vm10, %v1263_v5  ;;  %2542 = vmatpush3.msra.mxu0 %v1543_v7 }
 0x6ba   :  { %2544 = vmatmul.mubr.msk.f32.vlgmr.msra.gmra.mrb[16].mxu0 %vm98_vm0, %v3027_v22  ;;  %2546 = vmatprep.subr.mxu0 %v2829_v11 }
 0x6bb   :  { %2547 = vmatpush3.msra.mxu0 %v3037_v24  ;;  %2548 = vmatprep.mubr.msk.f32.mxu0 %vm2828_vm1, %v2829_v11 }
 0x6bc   :  { %2634 = vmatprep.subr.bf16.mxu0 %v2827_v8 }
 0x782   :  { %v1759_v12 = vpop.f32.mrb[18].mxu1 }
 0x783   :  { %v2555_v13 = vpop.f32.mrb[19].mxu1 }
 0x78d   :  { %v1612_v14 = vpop.f32.mrb[16].mxu0 }
 0x78e   :  { %v2545_v17 = vpop.f32.mrb[17].mxu0  ;;  %2549 = vmatmul.mubr.msk.f32.vlgmr.msra.gmra.mrb[18].mxu0 %vm98_vm0, %v1612_v14 }
 0x78f   :  { %2636 = vmatpush3.bf16.msra.mxu0 %v3043_v29  ;;  %2564 = vmatprep.mubr.msk.f32.mxu0 %vm2828_vm1, %v2829_v11 }
 0x790   :  { %2637 = vmatprep.subr.bf16.mxu0 %v2827_v8 }
 0x793   :  { %2639 = vmatpush3.bf16.msra.mxu0 %v3049_v34 }
 0x794   :  { %2640 = vmatprep.subr.bf16.mxu0 %v2827_v8 }
 0x796   :  { %2565 = vmatmul.mubr.msk.f32.vlgmr.msra.gmra.mrb[20].mxu0 %vm292_vm9, %v3101_v21 }
 0x797   :  { %2642 = vmatpush3.bf16.msra.mxu0 %v3060_v38  ;;  %2585 = vmatprep.mubr.msk.f32.mxu0 %vm2828_vm1, %v2829_v11 }
 0x798   :  { %2643 = vmatprep.subr.bf16.mxu0 %v2827_v8 }
 0x79b   :  { %2645 = vmatpush3.bf16.msra.mxu0 %v3064_v43 }
 0x79e   :  { %2586 = vmatmul.mubr.msk.f32.vlgmr.msra.gmra.mrb[22].mxu0 %vm292_vm9, %v3101_v21 }
 0x861   :  { %v1686_v22 = vpop.f32.mrb[18].mxu0 }
 0x862   :  { %v1760_v24 = vadd.f32 %v1759_v12, %v1686_v22  ;;  %v2550_v29 = vpop.f32.mrb[19].mxu0 }
 0x869   :  { %v1840_v34 = vpop.f32.mrb[20].mxu0 }
 0x86a   :  { %v1841_v15 = vadd.f32 %v3079_v9, %v1840_v34  ;;  %v2566_v18 = vpop.f32.mrb[21].mxu0 }
 0x86c   :  { %2568 = vmatpush3.msra.mxu1 %v1841_v15 }
 0x86d   :  { %2570 = vmatmul.mubr.msk.f32.vlgmr.msra.gmra.mrb[20].mxu1 %vm98_vm0, %v3083_v16  ;;  %2572 = vmatprep.subr.mxu1 %v2829_v11 }
 0x86e   :  { %2573 = vmatpush3.msra.mxu1 %v3092_v1  ;;  %2574 = vmatprep.mubr.msk.f32.mxu1 %vm2828_vm1, %v2829_v11 }
 0x86f   :  { %2588 = vmatprep.subr.mxu1 %v2829_v11 }
 0x871   :  { %v2066_v8 = vpop.f32.mrb[22].mxu0 }
 0x872   :  { %v2587_v38 = vpop.f32.mrb[23].mxu0  ;;  %v2067_v43 = vadd.f32 %v3110_v26, %v2066_v8 }
 0x940   :  { %v1910_v19 = vpop.f32.mrb[20].mxu1 }
 0x941   :  { %v2571_v9 = vpop.f32.mrb[21].mxu1  ;;  %2575 = vmatmul.mubr.msk.f32.vlgmr.msra.gmra.mrb[22].mxu1 %vm98_vm0, %v1910_v19 }
 0x942   :  { %2589 = vmatpush3.msra.mxu1 %v2067_v43  ;;  %2590 = vmatprep.mubr.msk.f32.mxu1 %vm2828_vm1, %v2829_v11 }
 0x943   :  { %2593 = vmatprep.subr.mxu1 %v2829_v11 }
 0x945   :  { %2591 = vmatmul.mubr.msk.f32.vlgmr.msra.gmra.mrb[24].mxu1 %vm98_vm0, %v3117_v32 }
 0x946   :  { %2594 = vmatpush3.msra.mxu1 %v3124_v36  ;;  %2595 = vmatprep.mubr.msk.f32.mxu1 %vm2828_vm1, %v2829_v11 }
 0xa14   :  { %v1984_v16 = vpop.f32.mrb[22].mxu1 }
 0xa15   :  { %v1988_v1 = vadd.f32 %v1984_v16, %v1760_v24  ;;  %v2576_v21 = vpop.f32.mrb[23].mxu1 }
 0xa18   :  { %v2136_v25 = vpop.f32.mrb[24].mxu1 }
 0xa19   :  { %v2592_v26 = vpop.f32.mrb[25].mxu1  ;;  %2596 = vmatmul.mubr.msk.f32.vlgmr.msra.gmra.mrb[26].mxu1 %vm98_vm0, %v2136_v25 }
 0xaec   :  { %v2210_v27 = vpop.f32.mrb[26].mxu1 }
 0xaed   :  { %v2214_v28 = vadd.f32 %v2210_v27, %v1988_v1  ;;  %v2597_v30 = vpop.f32.mrb[27].mxu1 }
 0xaef   :  { %v2215_v31 = vadd.f32 %v3150_v40, %v2214_v28 }
 0xaf1   :  { %v2217_v33 = vcombine.high %v2215_v31, %v2215_v31  ;;  %v2224_v32 = vrot.slane %v2215_v31, %v3152_v50 }
 0xaf3   :  { %v2231_v36 = vrot.slane %v2217_v33, %v3152_v50  ;;  %v2232_v37 = vcombine.high %v2224_v32, %v2224_v32  ;;  %v2240_v11 = vrot.slane %v2224_v32, %v3152_v50 }
 0xaf5   :  { %v2233_v41 = vcombine.high %v2231_v36, %v2231_v36  ;;  %v2247_v42 = vrot.slane %v2231_v36, %v3152_v50  ;;  %v2254_v3 = vrot.slane %v2232_v37, %v3152_v50  ;;  %v2262_v44 = vcombine.high %v2240_v11, %v2240_v11  ;;  %2274 = vst.msk [vmem:[#allocation11 + $0x1] sm:$0x1] %vm1272_vm10, %v2240_v11 }
 0xaf7   :  { %v2261_v45 = vrot.slane %v2233_v41, %v3152_v50  ;;  %v2263_v46 = vcombine.high %v2247_v42, %v2247_v42  ;;  %v2264_v35 = vcombine.high %v2254_v3, %v2254_v3  ;;  %2275 = vst.msk [vmem:[#allocation11 + $0x3] sm:$0x1] %vm1272_vm10, %v2254_v3  ;;  %2276 = vst.msk [vmem:[#allocation11 + $0x5] sm:$0x1] %vm1272_vm10, %v2262_v44 }
 0xaf8   :  { %2278 = vst.msk [vmem:[#allocation11 + $0x9] sm:$0x1] %vm1272_vm10, %v2247_v42 }
 0xaf9   :  { %v2265_v6 = vcombine.high %v2261_v45, %v2261_v45  ;;  %2277 = vst.msk [vmem:[#allocation11 + $0x7] sm:$0x1] %vm1272_vm10, %v2264_v35  ;;  %2279 = vst.msk [vmem:[#allocation11 + $0xb] sm:$0x1] %vm1272_vm10, %v2261_v45 }
 0xafa   :  { %2280 = vst.msk [vmem:[#allocation11 + $0xd] sm:$0x1] %vm1272_vm10, %v2263_v46 }
 0xafb   :  { %2281 = vst.msk [vmem:[#allocation11 + $0xf] sm:$0x1] %vm1272_vm10, %v2265_v6 }
 0xafc   :  { %2798 = shalt.err (!%p2795_p6)
}
 0xafd   :  { %s2799_s13 = scalar_lea.hbm %s3252_s7, 256 }
 0xafe   :  { %p2800_p7 = scmp.ne.s32.totalorder %s3252_s7, %s2799_s13  ;;  %p2803_p8 = scmp.lt.u32.totalorder %s2799_s13, %s3252_s7 }
 0xb00   :  { %p2805_p9 = pnand %p2803_p8, %p2800_p7 }
 0xb02   :  { %2808 = shalt.err (!%p2805_p9)
}
 0xb03   :  { %2293 = dma.vmem_to_hbm [thread:$0]  %s2288_s9, 256, %s3252_s7, [#allocation4], %s2822_s4, %s2822_s4, %s2823_s16  }
 0xb04   :  { %2815 = dma.done.wait [#allocation4], 256  }
 0xb05   :  { %2816 = vsyncadd [#allocation4], 4294967040 }
 0xb06   :  { %2297 = vsyncpa [#allocation3], 1 }
 0xb07   :  { %2298 = vsyncpa [#allocation6], 1 }
 0xb08   :  { %2299 = vsyncpa [#allocation9], 1 }
 0xb09   :  { %2300 = vsyncpa [#allocation4], 1 }

</bundles_post_ra>
